<compile_context>
chip_gen: v7x
topology: tpu7x:2x2x1
jax: 0.10.0
libtpu: 0.0.40
codegen_flags: <defaults>
</compile_context>

<pallas_src>
import jax
import jax.numpy as jnp
from jax import lax
from jax.experimental import pallas as pl
from jax.experimental.pallas import tpu as pltpu


def smoothmax_head_kernel(x_ref, w_ref, b_ref, params_ref, out_ref):
    # x_ref:      [TB, H]  VMEM (f32 or bf16 - goes straight to the MXU)
    # w_ref:      [C, H]   VMEM (torch layout, resident across the grid)
    # b_ref:      [C, 1]   VMEM (resident)
    # params_ref: [3]      SMEM = [lam, 1/lam, 1/scaler]
    # out_ref:    [1, TB]  VMEM (lane-dense row)

    # Scalar reads first: keep scalar slots off the vector critical path.
    lam = params_ref[0]
    inv_lam = params_ref[1]
    inv_scaler = params_ref[2]

    x = x_ref[...]                       # native dtype -> MXU
    w = w_ref[...]
    b = b_ref[...].astype(jnp.float32)   # [C, 1]

    # logits^T [C, TB] = W [C,H] . x^T  (contract H on both sides; the
    # standard A@B^T MXU pattern -> no materialized transpose).
    # HIGHEST precision keeps f32 inputs faithful to the torch f32 Linear;
    # the kernel is HBM-bound, so the extra MXU passes are hidden.
    logits_t = lax.dot_general(
        w, x,
        dimension_numbers=(((1,), (1,)), ((), ())),
        preferred_element_type=jnp.float32,
        precision=lax.Precision.HIGHEST,
    ) + b                                                   # [C, TB] f32

    # Softmax denominator over classes (axis 0 = sublane axis, XLU reduce).
    m = jnp.max(logits_t, axis=0, keepdims=True)            # [1, TB]
    e = jnp.exp(logits_t - m)                               # max(e) == 1 exactly
    sum_e = jnp.sum(e, axis=0, keepdims=True)               # [1, TB]
    # Exact reciprocal: it is a single [1, TB] row, so the exact form is
    # essentially free and avoids approx-recip error near the 1e-8 clamp.
    inv_sum_e = 1.0 / sum_e                                  # [1, TB]

    # smooth_max = (1/lam) * logsumexp(lam * p) over classes, p = e * inv_sum_e.
    #   max(lam*p) = lam * inv_sum_e                 (exact: max(e) == 1)
    #   lam*p - max(lam*p) = (lam*inv_sum_e)*(e - 1) (fused: no p tile,
    #                                                 two fewer [C,TB] vmuls)
    scale = lam * inv_sum_e                                  # [1, TB]
    sum_exp = jnp.sum(jnp.exp(scale * (e - 1.0)), axis=0, keepdims=True)
    smooth_max = inv_sum_e + inv_lam * jnp.log(sum_exp)      # [1, TB]

    eps = 1e-8
    # Lane-dense store: one unmasked row of TB lanes.
    out_ref[...] = jnp.clip((1.0 - smooth_max) * inv_scaler, eps, 1.0 - eps)


def _round_up(a, m):
    return (a + m - 1) // m * m


def _resident_spec(block_shape):
    """BlockSpec with constant index_map, single-buffered when supported."""
    index_map = lambda i: (0,) * len(block_shape)
    if hasattr(pl, "Buffered"):
        try:
            return pl.BlockSpec(block_shape, index_map,
                                pipeline_mode=pl.Buffered(1))
        except TypeError:
            pass  # older jax without pipeline_mode: fall back to default
    return pl.BlockSpec(block_shape, index_map)


def smoothmax_classifier_head(cls_token, weight_ch, bias_c, lam, scaler, *,
                              tb=1024):
    """cls_token: [B, H]; weight_ch: [C, H] (torch layout); bias_c: [C];
    lam, scaler: python floats.  Returns [B] f32.

    Feed cls_token / weight_ch in bf16 if the producer already emits bf16
    (halves HBM traffic of this mem-bound kernel); do not upcast here.
    """
    B, H = cls_token.shape
    C = weight_ch.shape[0]
    x_itemsize = cls_token.dtype.itemsize
    w_itemsize = weight_ch.dtype.itemsize

    # ---- batch tile selection ------------------------------------------------
    if B <= 128:
        TB = 128                          # full 128-lane unmasked output store
    else:
        TB = max(256, (tb // 128) * 128)
        # Keep >= 2 tiles so both v7x TensorCores get work on the parallel axis.
        while TB > 256 and pl.cdiv(B, TB) < 2:
            TB //= 2
        # Keep the double-buffered x tile <= ~16 MiB (fits even v5e's scoped
        # default once vmem_limit_bytes below raises it).
        while TB > 128 and 2 * TB * H * x_itemsize > 16 * 1024 * 1024:
            TB //= 2
    B_pad = _round_up(B, TB)
    if B_pad != B:
        cls_token = jnp.pad(cls_token, ((0, B_pad - B), (0, 0)))
    grid = (B_pad // TB,)

    # ---- explicit VMEM budget (v7x has only 64 MiB physical) ------------------
    sub_w = {4: 8, 2: 16, 1: 32}.get(w_itemsize, 8)
    H_pad = _round_up(H, 128)
    x_bytes = 2 * TB * H_pad * x_itemsize                       # x, double-buffered
    w_bytes = 2 * _round_up(C, sub_w) * H_pad * w_itemsize      # W (worst case 2 bufs)
    b_bytes = 2 * _round_up(C, 8) * 128 * 4                     # bias block padding
    o_bytes = 2 * 8 * TB * 4                                    # (1, TB) out, 2 bufs
    vmem_budget = x_bytes + w_bytes + b_bytes + o_bytes
    vmem_limit = int(min(48 * 1024 * 1024,                      # headroom on v7x
                         max(2 * vmem_budget, 32 * 1024 * 1024)))

    cost = pl.CostEstimate(
        flops=2 * B_pad * H * C,
        transcendentals=2 * B_pad * C,
        bytes_accessed=(B_pad * H * x_itemsize + C * H * w_itemsize
                        + C * 4 + B_pad * 4),
    )

    # Pack all scalars into one SMEM array; reciprocals precomputed once.
    params = jnp.array([lam, 1.0 / lam, 1.0 / scaler], dtype=jnp.float32)
    bias_col = bias_c.astype(jnp.float32).reshape(C, 1)

    out = pl.pallas_call(
        smoothmax_head_kernel,
        out_shape=jax.ShapeDtypeStruct((1, B_pad), jnp.float32),
        grid_spec=pltpu.PrefetchScalarGridSpec(
            num_scalar_prefetch=0,
            grid=grid,
            in_specs=[
                pl.BlockSpec((TB, H), lambda i: (i, 0)),            # x tile (streamed)
                _resident_spec((C, H)),                              # W, single-buffered
                _resident_spec((C, 1)),                              # bias, single-buffered
                pl.BlockSpec(memory_space=pltpu.MemorySpace.SMEM),   # scalars
            ],
            out_specs=pl.BlockSpec((1, TB), lambda i: (0, i)),       # lane-dense row
        ),
        compiler_params=pltpu.CompilerParams(
            dimension_semantics=("parallel",),   # shards batch across TCs on v7x
            vmem_limit_bytes=vmem_limit,
        ),
        cost_estimate=cost,
    )(cls_token, weight_ch, bias_col, params)
    return out[0, :B]


def reference(cls_token, weight_ch, bias_c, lam, scaler):
    logits = jnp.dot(cls_token, weight_ch.T,
                     precision=lax.Precision.HIGHEST) + bias_c[None, :]
    p = jax.nn.softmax(logits, axis=1)
    smooth_max = (1.0 / lam) * jax.nn.logsumexp(lam * p, axis=1)
    f = 1.0 - smooth_max
    eps = 1e-8
    return jnp.clip(f / scaler, eps, 1.0 - eps)


if __name__ == "__main__":
    B, H, C = 8, 32, 4            # batch, hidden_size, num_classes
    lam_val = 100.0
    scaler_val = 1.0 - 1.0 / C    # torch: 1 - 1/num_classes

    key = jax.random.PRNGKey(0)
    kx, kw, kb = jax.random.split(key, 3)

    # nn.Linear-style deterministic init: U(-1/sqrt(H), 1/sqrt(H))
    bound = 1.0 / (H ** 0.5)
    cls_token = jax.random.normal(kx, (B, H), dtype=jnp.float32)
    weight_ch = jax.random.uniform(kw, (C, H), minval=-bound, maxval=bound,
                                   dtype=jnp.float32)   # torch weight layout [C, H]
    bias_c = jax.random.uniform(kb, (C,), minval=-bound, maxval=bound,
                                dtype=jnp.float32)

    out = smoothmax_classifier_head(cls_token, weight_ch, bias_c,
                                    lam_val, scaler_val)
    out = jax.block_until_ready(out)

    ref = reference(cls_token, weight_ch, bias_c, lam_val, scaler_val)
    assert out.shape == (B,), out.shape
    # Exact reciprocal + HIGHEST-precision matmul -> tight tolerance again.
    assert jnp.allclose(out, ref, atol=1e-5, rtol=1e-4), (out, ref)

    print("KERNEL_OK")
</pallas_src>

<mosaic_0001>
module attributes {stable_mosaic.version = 11 : i64} {
  func.func @smoothmax_head_kernel(%arg0: i32, %arg1: memref<128x32xf32, #tpu.memory_space<vmem>>, %arg2: memref<4x32xf32, #tpu.memory_space<vmem>>, %arg3: memref<4x1xf32, #tpu.memory_space<vmem>>, %arg4: memref<3xf32, #tpu.memory_space<smem>>, %arg5: memref<1x128xf32, #tpu.memory_space<vmem>>) attributes {dimension_semantics = [#tpu.dimension_semantics<parallel>], iteration_bounds = array<i64: 1>, scalar_prefetch = 0 : i64, scratch_operands = 0 : i64, tpu.core_type = #tpu.core_type<tc>, window_params = [{transform_indices = @transform_0, window_bounds = array<i64: 128, 32>}, {pipeline_mode = #tpu.pipeline_mode<synchronous>, transform_indices = @transform_1, window_bounds = array<i64: 4, 32>}, {pipeline_mode = #tpu.pipeline_mode<synchronous>, transform_indices = @transform_2, window_bounds = array<i64: 4, 1>}, {transform_indices = @transform_3, window_bounds = array<i64: 3>}, {transform_indices = @transform_4, window_bounds = array<i64: 1, 128>}]} {
    %c0 = arith.constant 0 : index
    %0 = memref.load %arg4[%c0] : memref<3xf32, #tpu.memory_space<smem>>
    %c1 = arith.constant 1 : index
    %1 = memref.load %arg4[%c1] : memref<3xf32, #tpu.memory_space<smem>>
    %c2 = arith.constant 2 : index
    %2 = memref.load %arg4[%c2] : memref<3xf32, #tpu.memory_space<smem>>
    %c0_0 = arith.constant 0 : index
    %c0_1 = arith.constant 0 : index
    %3 = vector.load %arg1[%c0_0, %c0_1] : memref<128x32xf32, #tpu.memory_space<vmem>>, vector<128x32xf32>
    %c0_2 = arith.constant 0 : index
    %c0_3 = arith.constant 0 : index
    %4 = vector.load %arg2[%c0_2, %c0_3] : memref<4x32xf32, #tpu.memory_space<vmem>>, vector<4x32xf32>
    %c0_4 = arith.constant 0 : index
    %c0_5 = arith.constant 0 : index
    %5 = vector.load %arg3[%c0_4, %c0_5] : memref<4x1xf32, #tpu.memory_space<vmem>>, vector<4x1xf32>
    %cst = arith.constant dense<0.000000e+00> : vector<4x128xf32>
    %6 = tpu.matmul %4, %3, %cst {dimension_numbers = #tpu.dot_dimension_numbers<[1], [1], [0], [0], [0, 0, 1, 0], [], []>, precision = #tpu.contract_precision<fp32>} : vector<4x32xf32>, vector<128x32xf32>, vector<4x128xf32> -> vector<4x128xf32>
    %7 = vector.broadcast %5 : vector<4x1xf32> to vector<4x128xf32>
    %8 = arith.addf %6, %7 : vector<4x128xf32>
    %cst_6 = arith.constant dense<0xFF800000> : vector<128xf32>
    %9 = vector.multi_reduction <maximumf>, %8, %cst_6 [0] : vector<4x128xf32> to vector<128xf32>
    %10 = vector.shape_cast %9 : vector<128xf32> to vector<1x128xf32>
    %11 = vector.broadcast %10 : vector<1x128xf32> to vector<4x128xf32>
    %12 = arith.subf %8, %11 : vector<4x128xf32>
    %13 = math.exp %12 : vector<4x128xf32>
    %cst_7 = arith.constant dense<0.000000e+00> : vector<128xf32>
    %14 = vector.multi_reduction <add>, %13, %cst_7 [0] : vector<4x128xf32> to vector<128xf32>
    %15 = vector.shape_cast %14 : vector<128xf32> to vector<1x128xf32>
    %cst_8 = arith.constant 1.000000e+00 : f32
    %16 = vector.broadcast %cst_8 : f32 to vector<1x128xf32>
    %17 = arith.divf %16, %15 : vector<1x128xf32>
    %18 = vector.broadcast %0 : f32 to vector<1x128xf32>
    %19 = arith.mulf %18, %17 : vector<1x128xf32>
    %cst_9 = arith.constant 1.000000e+00 : f32
    %20 = vector.broadcast %cst_9 : f32 to vector<4x128xf32>
    %21 = arith.subf %13, %20 : vector<4x128xf32>
    %22 = vector.broadcast %19 : vector<1x128xf32> to vector<4x128xf32>
    %23 = arith.mulf %22, %21 : vector<4x128xf32>
    %24 = math.exp %23 : vector<4x128xf32>
    %cst_10 = arith.constant dense<0.000000e+00> : vector<128xf32>
    %25 = vector.multi_reduction <add>, %24, %cst_10 [0] : vector<4x128xf32> to vector<128xf32>
    %26 = vector.shape_cast %25 : vector<128xf32> to vector<1x128xf32>
    %27 = math.log %26 : vector<1x128xf32>
    %28 = vector.broadcast %1 : f32 to vector<1x128xf32>
    %29 = arith.mulf %28, %27 : vector<1x128xf32>
    %30 = arith.addf %17, %29 : vector<1x128xf32>
    %cst_11 = arith.constant 1.000000e+00 : f32
    %31 = vector.broadcast %cst_11 : f32 to vector<1x128xf32>
    %32 = arith.subf %31, %30 : vector<1x128xf32>
    %33 = vector.broadcast %2 : f32 to vector<1x128xf32>
    %34 = arith.mulf %32, %33 : vector<1x128xf32>
    %cst_12 = arith.constant 9.99999993E-9 : f32
    %cst_13 = arith.constant 1.000000e+00 : f32
    %35 = vector.broadcast %cst_12 : f32 to vector<1x128xf32>
    %36 = arith.maximumf %35, %34 : vector<1x128xf32>
    %37 = vector.broadcast %cst_13 : f32 to vector<1x128xf32>
    %38 = arith.minimumf %37, %36 : vector<1x128xf32>
    %c0_14 = arith.constant 0 : index
    %c0_15 = arith.constant 0 : index
    %39 = vector.load %arg5[%c0_14, %c0_15] : memref<1x128xf32, #tpu.memory_space<vmem>>, vector<1x128xf32>
    tpu.vector_store %arg5[%c0_14, %c0_15], %38 {strides = array<i32>} : memref<1x128xf32, #tpu.memory_space<vmem>>, vector<1x128xf32>,
    return
  }
  func.func @transform_0(%arg0: i32) -> (i32, i32) {
    %c0_i32 = arith.constant 0 : i32
    %c0_i32_0 = arith.constant 0 : i32
    return %arg0, %c0_i32 : i32, i32
  }
  func.func @transform_1(%arg0: i32) -> (i32, i32) {
    %c0_i32 = arith.constant 0 : i32
    %c0_i32_0 = arith.constant 0 : i32
    %c0_i32_1 = arith.constant 0 : i32
    return %c0_i32, %c0_i32_0 : i32, i32
  }
  func.func @transform_2(%arg0: i32) -> (i32, i32) {
    %c0_i32 = arith.constant 0 : i32
    %c0_i32_0 = arith.constant 0 : i32
    %c0_i32_1 = arith.constant 0 : i32
    return %c0_i32, %c0_i32_0 : i32, i32
  }
  func.func @transform_3(%arg0: i32) -> i32 {
    %c0_i32 = arith.constant 0 : i32
    %c0_i32_0 = arith.constant 0 : i32
    return %c0_i32 : i32
  }
  func.func @transform_4(%arg0: i32) -> (i32, i32) {
    %c0_i32 = arith.constant 0 : i32
    %c0_i32_0 = arith.constant 0 : i32
    return %c0_i32, %arg0 : i32, i32
  }
}

</mosaic_0001>

<bundles_post_ra>
// kernel: tpu_custom_call.1
= control target key start
LH: loop header
LB: loop body
LE: loop exit
PB: predicated region body
PF: predicated region fallthrough
CT: control target
= control target key end

     0   :  { %9 = vsyncpa [#allocation4], 0  ;;  %s1666_s0 = inlined_call_operand.vmem [shape: f32[128,32], index: 0, kind: input, shape index: {}]   ;;  %s1667_s1 = inlined_call_operand.vmem [shape: f32[4,32], index: 1, kind: input, shape index: {}]   ;;  %s1668_s2 = inlined_call_operand.vmem [shape: f32[4,1], index: 2, kind: input, shape index: {}]   ;;  %s1669_s3 = inlined_call_operand.vmem [shape: f32[3], index: 3, kind: input, shape index: {}]   ;;  %s1670_s4 = inlined_call_operand.hbm [shape: f32[1,128], index: 4, kind: output, shape index: {}]  }
   0x1   :  { %10 = vsyncpa [#allocation3], 0  ;;  %s23_s17 = sshll.u32 %s1669_s3, 4  ;;  %s24_s17 = int_to_ptr.vmem [resolvable:$true] %s23_s17 }
   0x2   :  { %s1293_s18 = scalar_lea.vmem %s24_s17, 16  ;;  %p1298_p1 = scmp.lt.s32.totalorder %s24_s17, %s24_s17 }
   0x3   :  { %p1294_p0 = scmp.ne.s32.totalorder %s24_s17, %s1293_s18  ;;  %p1299_p2 = scmp.lt.s32.totalorder %s1293_s18, %s1293_s18 }
   0x5   :  { %p1300_p3 = por %p1299_p2, %p1298_p1 }
   0x7   :  { %p1301_p4 = pnand %p1300_p3, %p1294_p0 }
   0x9   :  { %1304 = shalt.err (!%p1301_p4)
}
   0xa   :  { %s1331_s19 = smov [#allocation2]  }
   0xb   :  { %26 = dma.vmem_to_smem %s24_s17, 16, %s1331_s19, [#allocation4]  }
   0xc   :  { %1327 = dma.done.wait [#allocation4], 16  }
   0xd   :  { %1328 = vsyncadd [#allocation4], 4294967280 }
   0xe   :  { %30 = sfence }
   0xf   :  { %v34_v0 = vld [vmem:[%s1666_s0] sm:$0xff]  ;;  %v35_v1 = vld [vmem:[%s1666_s0 + $0x8] sm:$0xff]  ;;  %vm57_vm0 = vcmask 261120   ;;  %v36_v2 = vld [vmem:[%s1666_s0 + $0x10] sm:$0xff]  ;;  %v1332_v3 = vmov 0.0|0.0   ;;  %vm1333_vm1 = vmmov 0  }
  0x10   :  { %1124 = vmatprep.subr.bf16.mxu1 %v1332_v3  ;;  %1196 = vmatprep.subr.bf16.mxu0 %v1332_v3  ;;  %v62_v4 = vsel %vm57_vm0, %v34_v0, 0  ;;  %v65_v5 = vsel %vm57_vm0, %v35_v1, 0  ;;  %v37_v6 = vld [vmem:[%s1666_s0 + $0x18] sm:$0xff]  ;;  %v68_v9 = vsel %vm57_vm0, %v36_v2, 0  ;;  %v38_v14 = vld [vmem:[%s1666_s0 + $0x20] sm:$0xff]  ;;  %v39_v15 = vld [vmem:[%s1666_s0 + $0x28] sm:$0xff] }
  0x11   :  { %v110_v7 = vand.u32 4294901760, %v62_v4  ;;  %v113_v8 = vand.u32 4294901760, %v65_v5  ;;  %v71_v10 = vsel %vm57_vm0, %v37_v6, 0  ;;  %v116_v12 = vand.u32 4294901760, %v68_v9  ;;  %v40_v21 = vld [vmem:[%s1666_s0 + $0x30] sm:$0xff]  ;;  %v41_v22 = vld [vmem:[%s1666_s0 + $0x38] sm:$0xff] }
  0x12   :  { %v119_v13 = vand.u32 4294901760, %v71_v10  ;;  %v74_v17 = vsel %vm57_vm0, %v38_v14, 0  ;;  %v77_v18 = vsel %vm57_vm0, %v39_v15, 0  ;;  %v1334_v23 = vmov 0.0   ;;  %v42_v29 = vld [vmem:[%s1666_s0 + $0x40] sm:$0xff]  ;;  %v43_v30 = vld [vmem:[%s1666_s0 + $0x48] sm:$0xff] }
  0x13   :  { %v1383_v11 = vpack.c.bf16 %v113_v8, %v110_v7  ;;  %v122_v19 = vand.u32 4294901760, %v74_v17  ;;  %v125_v20 = vand.u32 4294901760, %v77_v18  ;;  %946 = vmatprep.mubr.msk.f32.mxu1 %vm1333_vm1, %v1334_v23  ;;  %1051 = vmatprep.mubr.msk.f32.mxu0 %vm1333_vm1, %v1334_v23  ;;  %v80_v25 = vsel %vm57_vm0, %v40_v21, 0  ;;  %v44_v43 = vld [vmem:[%s1666_s0 + $0x50] sm:$0xff]  ;;  %v45_v44 = vld [vmem:[%s1666_s0 + $0x58] sm:$0xff]  ;;  %v46_v60 = vld [vmem:[%s1666_s0 + $0x60] sm:$0xff] }
  0x14   :  { %v1395_v16 = vpack.c.bf16 %v119_v13, %v116_v12  ;;  %v83_v26 = vsel %vm57_vm0, %v41_v22, 0  ;;  %v128_v27 = vand.u32 4294901760, %v80_v25  ;;  %v86_v31 = vsel %vm57_vm0, %v42_v29, 0  ;;  %v47_v61 = vld [vmem:[%s1666_s0 + $0x68] sm:$0xff]  ;;  %s809_s26 = sld [smem:[#allocation2 + $0x1]]  ;;  %s810_s27 = sld [smem:[#allocation2 + $0x2]] }
  0x15   :  { %1126 = vmatpush3.bf16.xpose.msra.mxu1 %v1383_v11  ;;  %1198 = vmatpush3.bf16.xpose.msra.mxu0 %v1383_v11  ;;  %v1413_v24 = vpack.c.bf16 %v125_v20, %v122_v19  ;;  %v131_v28 = vand.u32 4294901760, %v83_v26  ;;  %v89_v33 = vsel %vm57_vm0, %v43_v30, 0  ;;  %v1431_v34 = vsub.f32 %v62_v4, %v110_v7  ;;  %s1336_s28 = smov [#allocation5]  }
  0x16   :  { %1127 = vmatprep.subr.bf16.mxu1 %v1332_v3  ;;  %1199 = vmatprep.subr.bf16.mxu0 %v1332_v3  ;;  %v1433_v35 = vsub.f32 %v65_v5, %v113_v8  ;;  %v1435_v36 = vsub.f32 %v68_v9, %v116_v12  ;;  %v1437_v37 = vsub.f32 %v71_v10, %v119_v13  ;;  %v134_v38 = vand.u32 4294901760, %v86_v31  ;;  %v50_v5 = vld [vmem:[%s1667_s1] sm:$0xf]  ;;  %v48_v8 = vld [vmem:[%s1666_s0 + $0x70] sm:$0xff]  ;;  %v49_v9 = vld [vmem:[%s1666_s0 + $0x78] sm:$0xff]  ;;  %s800_s29 = sshll.u32 %s1336_s28, 4  ;;  %s801_s29 = int_to_ptr.vmem [resolvable:$true] %s800_s29 }
  0x17   :  { %v1428_v32 = vpack.c.bf16 %v131_v28, %v128_v27  ;;  %v1439_v39 = vsub.f32 %v74_v17, %v122_v19  ;;  %v1441_v40 = vsub.f32 %v77_v18, %v125_v20  ;;  %v1443_v41 = vsub.f32 %v80_v25, %v128_v27  ;;  %s1305_s30 = scalar_lea.vmem %s801_s29, 16  ;;  %s1309_s5 = scalar_lea.vmem %s801_s29, 32 }
  0x18   :  { %v137_v42 = vand.u32 4294901760, %v89_v33  ;;  %v1452_v45 = vsub.f32 %v83_v26, %v131_v28  ;;  %v1455_v46 = vsub.f32 %v86_v31, %v134_v38  ;;  %v1173_v47 = vpack.c.bf16 %v1433_v35, %v1431_v34  ;;  %p1306_p5 = scmp.ne.s32.totalorder %s801_s29, %s1305_s30  ;;  %p1310_p6 = scmp.lt.s32.totalorder %s801_s29, %s801_s29 }
  0x19   :  { %v1176_v49 = vpack.c.bf16 %v1437_v37, %v1435_v36  ;;  %v1179_v50 = vpack.c.bf16 %v1441_v40, %v1439_v39  ;;  %v92_v51 = vsel %vm57_vm0, %v44_v43, 0  ;;  %v95_v52 = vsel %vm57_vm0, %v45_v44, 0  ;;  %p1311_p7 = scmp.lt.s32.totalorder %s1309_s5, %s1305_s30 }
  0x1a   :  { %v1461_v48 = vsub.f32 %v89_v33, %v137_v42  ;;  %v1182_v53 = vpack.c.bf16 %v1452_v45, %v1443_v41  ;;  %v1473_v55 = vpack.c.bf16 %v137_v42, %v134_v38  ;;  %v140_v56 = vand.u32 4294901760, %v92_v51 }
  0x1b   :  { %v143_v57 = vand.u32 4294901760, %v95_v52  ;;  %v98_v63 = vsel %vm57_vm0, %v46_v60, 0  ;;  %v101_v0 = vsel %vm57_vm0, %v47_v61, 0  ;;  %v59_v10 = vsel %vm57_vm0, %v50_v5, 0  ;;  %p1312_p8 = por %p1311_p7, %p1310_p6 }
  0x1c   :  { %v1185_v54 = vpack.c.bf16 %v1461_v48, %v1455_v46  ;;  %v1475_v58 = vsub.f32 %v92_v51, %v140_v56  ;;  %v146_v2 = vand.u32 4294901760, %v98_v63  ;;  %v149_v4 = vand.u32 4294901760, %v101_v0 }
  0x1d   :  { %1129 = vmatpush3.bf16.xpose.msra.mxu1 %v1395_v16  ;;  %1201 = vmatpush3.bf16.xpose.msra.mxu0 %v1395_v16  ;;  %v1477_v59 = vsub.f32 %v95_v52, %v143_v57  ;;  %v1493_v1 = vpack.c.bf16 %v143_v57, %v140_v56  ;;  %v104_v13 = vsel %vm57_vm0, %v48_v8, 0  ;;  %v107_v14 = vsel %vm57_vm0, %v49_v9, 0  ;;  %p1313_p9 = pnand %p1312_p8, %p1306_p5 }
  0x1e   :  { %1130 = vmatprep.subr.bf16.mxu1 %v1332_v3  ;;  %1202 = vmatprep.subr.bf16.mxu0 %v1332_v3  ;;  %v1498_v6 = vsub.f32 %v98_v63, %v146_v2  ;;  %v1500_v7 = vsub.f32 %v101_v0, %v149_v4  ;;  %v1517_v15 = vand.u32 4294901760, %v59_v10  ;;  %v1519_v17 = vpack.c.bf16 %v149_v4, %v146_v2  ;;  %v51_v4 = vld [vmem:[%s1668_s2] sm:$0xf]  ;;  %s31_s2 = sld [smem:[#allocation2]] }
  0x1f   :  { %v1188_v62 = vpack.c.bf16 %v1477_v59, %v1475_v58  ;;  %v152_v18 = vand.u32 4294901760, %v104_v13  ;;  %v155_v19 = vand.u32 4294901760, %v107_v14  ;;  %v203_v25 = vand.u32 4294901760, %v1431_v34 }
  0x20   :  { %v1191_v12 = vpack.c.bf16 %v1500_v7, %v1498_v6  ;;  %v1526_v22 = vsub.f32 %v59_v10, %v1517_v15  ;;  %v210_v26 = vand.u32 4294901760, %v1433_v35  ;;  %v217_v43 = vand.u32 4294901760, %v1435_v36 }
  0x21   :  { %v1521_v20 = vsub.f32 %v104_v13, %v152_v18  ;;  %v1523_v21 = vsub.f32 %v107_v14, %v155_v19  ;;  %v1537_v29 = vpack.c.bf16 %v155_v19, %v152_v18  ;;  %v204_v30 = vsub.f32 %v1431_v34, %v203_v25 }
  0x22   :  { %v192_v28 = vand.u32 4294901760, %v1526_v22  ;;  %v211_v31 = vsub.f32 %v1433_v35, %v210_v26  ;;  %v224_v44 = vand.u32 4294901760, %v1437_v37  ;;  %v1221_v56 = vpack.c.bf16 %v210_v26, %v203_v25 }
  0x23   :  { %v1194_v27 = vpack.c.bf16 %v1523_v21, %v1521_v20  ;;  %v205_v38 = vand.u32 4294901760, %v204_v30  ;;  %v218_v57 = vsub.f32 %v1435_v36, %v217_v43  ;;  %v231_v61 = vand.u32 4294901760, %v1439_v39 }
  0x24   :  { %v193_v33 = vsub.f32 %v1526_v22, %v192_v28  ;;  %v212_v42 = vand.u32 4294901760, %v211_v31  ;;  %v225_v60 = vsub.f32 %v1437_v37, %v224_v44  ;;  %v238_v2 = vand.u32 4294901760, %v1441_v40 }
  0x25   :  { %1132 = vmatpush3.bf16.xpose.msra.mxu1 %v1413_v24  ;;  %1204 = vmatpush3.bf16.xpose.msra.mxu0 %v1413_v24  ;;  %v219_v63 = vand.u32 4294901760, %v218_v57  ;;  %v1335_v5 = vmov 0   ;;  %v1224_v9 = vpack.c.bf16 %v224_v44, %v217_v43  ;;  %v232_v10 = vsub.f32 %v1439_v39, %v231_v61 }
  0x26   :  { %1133 = vmatprep.subr.bf16.mxu1 %v1332_v3  ;;  %1205 = vmatprep.subr.bf16.mxu0 %v1332_v3  ;;  %v194_v51 = vand.u32 4294901760, %v193_v33  ;;  %v1149_v52 = vpack.c.bf16 %v212_v42, %v205_v38  ;;  %v226_v0 = vand.u32 4294901760, %v225_v60  ;;  %v239_v13 = vsub.f32 %v1441_v40, %v238_v2 }
  0x27   :  { %1284 = vset.pattern.permute.xlu0 %v1335_v5  ;;  %v233_v14 = vand.u32 4294901760, %v232_v10  ;;  %v245_v19 = vand.u32 4294901760, %v1443_v41  ;;  %v252_v25 = vand.u32 4294901760, %v1452_v45  ;;  %v259_v42 = vand.u32 4294901760, %v1455_v46 }
  0x28   :  { %v1152_v8 = vpack.c.bf16 %v226_v0, %v219_v63  ;;  %54 = vperm.xlu0 %1284, %v51_v4   ;;  %v240_v18 = vand.u32 4294901760, %v239_v13  ;;  %v266_v43 = vand.u32 4294901760, %v1461_v48  ;;  %v280_v63 = vand.u32 4294901760, %v1477_v59 }
  0x29   :  { %v246_v30 = vsub.f32 %v1443_v41, %v245_v19  ;;  %v253_v31 = vsub.f32 %v1452_v45, %v252_v25  ;;  %v287_v10 = vand.u32 4294901760, %v1498_v6  ;;  %v294_v13 = vand.u32 4294901760, %v1500_v7 }
  0x2a   :  { %v1155_v26 = vpack.c.bf16 %v240_v18, %v233_v14  ;;  %v281_v5 = vsub.f32 %v1477_v59, %v280_v63  ;;  %vm750_vm2 = vcmask 1043456  }
  0x2b   :  { %v247_v33 = vand.u32 4294901760, %v246_v30  ;;  %v254_v38 = vand.u32 4294901760, %v253_v31  ;;  %v301_v30 = vand.u32 4294901760, %v1521_v20  ;;  %v308_v31 = vand.u32 4294901760, %v1523_v21 }
  0x2d   :  { %1135 = vmatpush3.bf16.xpose.msra.mxu1 %v1428_v32  ;;  %1207 = vmatpush3.bf16.xpose.msra.mxu0 %v1428_v32  ;;  %v1158_v44 = vpack.c.bf16 %v254_v38, %v247_v33  ;;  %v1239_v38 = vpack.c.bf16 %v294_v13, %v287_v10 }
  0x2e   :  { %1136 = vmatprep.subr.bf16.mxu1 %v1332_v3  ;;  %1208 = vmatprep.subr.bf16.mxu0 %v1332_v3 }
  0x35   :  { %1138 = vmatpush3.bf16.xpose.msra.mxu1 %v1473_v55  ;;  %1210 = vmatpush3.bf16.xpose.msra.mxu0 %v1473_v55 }
  0x36   :  { %1139 = vmatprep.subr.bf16.mxu1 %v1332_v3  ;;  %1211 = vmatprep.subr.bf16.mxu0 %v1332_v3 }
  0x3d   :  { %1141 = vmatpush3.bf16.xpose.msra.mxu1 %v1493_v1  ;;  %1213 = vmatpush3.bf16.xpose.msra.mxu0 %v1493_v1 }
  0x3e   :  { %1142 = vmatprep.subr.bf16.mxu1 %v1332_v3  ;;  %1214 = vmatprep.subr.bf16.mxu0 %v1332_v3 }
  0x45   :  { %1144 = vmatpush3.bf16.xpose.msra.mxu1 %v1519_v17  ;;  %1216 = vmatpush3.bf16.xpose.msra.mxu0 %v1519_v17 }
  0x46   :  { %1145 = vmatprep.subr.bf16.mxu1 %v1332_v3  ;;  %1217 = vmatprep.subr.bf16.mxu0 %v1332_v3 }
  0x4d   :  { %1147 = vmatpush3.bf16.xpose.msra.mxu1 %v1537_v29  ;;  %1219 = vmatpush3.bf16.xpose.msra.mxu0 %v1537_v29 }
  0x4e   :  { %1148 = vmatprep.subr.bf16.mxu1 %v1332_v3  ;;  %1220 = vmatprep.subr.bf16.mxu0 %v1332_v3 }
  0x54   :  { %947 = vmatmul.mubr.f32.vlgmr.msra.gmra.mrb[0].mxu1 %v194_v51  ;;  %1052 = vmatmul.mubr.f32.vlgmr.msra.gmra.mrb[0].mxu0 %v192_v28  ;;  %v1227_v28 = vpack.c.bf16 %v238_v2, %v231_v61  ;;  %v1230_v51 = vpack.c.bf16 %v252_v25, %v245_v19  ;;  %v273_v61 = vand.u32 4294901760, %v1475_v58  ;;  %v1233_v2 = vpack.c.bf16 %v266_v43, %v259_v42 }
  0x55   :  { %1150 = vmatpush3.bf16.xpose.msra.mxu1 %v1149_v52  ;;  %1222 = vmatpush3.bf16.xpose.msra.mxu0 %v1221_v56  ;;  %v260_v52 = vsub.f32 %v1455_v46, %v259_v42  ;;  %v267_v56 = vsub.f32 %v1461_v48, %v266_v43  ;;  %v288_v19 = vsub.f32 %v1498_v6, %v287_v10 }
  0x56   :  { %1151 = vmatprep.subr.bf16.mxu1 %v1332_v3  ;;  %1223 = vmatprep.subr.bf16.mxu0 %v1332_v3  ;;  %v274_v4 = vsub.f32 %v1475_v58, %v273_v61  ;;  %v1236_v18 = vpack.c.bf16 %v280_v63, %v273_v61  ;;  %v295_v25 = vsub.f32 %v1500_v7, %v294_v13  ;;  %v785_v63 = vstv %s809_s26 }
  0x57   :  { %981 = vmatprep.mubr.msk.f32.mxu1 %vm1333_vm1, %v1334_v23  ;;  %1086 = vmatprep.mubr.msk.f32.mxu0 %vm1333_vm1, %v1334_v23  ;;  %v261_v57 = vand.u32 4294901760, %v260_v52  ;;  %v268_v60 = vand.u32 4294901760, %v267_v56  ;;  %v302_v42 = vsub.f32 %v1521_v20, %v301_v30  ;;  %v309_v43 = vsub.f32 %v1523_v21, %v308_v31 }
  0x58   :  { %v1242_v56 = vpack.c.bf16 %v308_v31, %v301_v30 }
  0x59   :  { %v1161_v0 = vpack.c.bf16 %v268_v60, %v261_v57 }
  0x5d   :  { %1153 = vmatpush3.bf16.xpose.msra.mxu1 %v1152_v8  ;;  %1225 = vmatpush3.bf16.xpose.msra.mxu0 %v1224_v9  ;;  %v275_v8 = vand.u32 4294901760, %v274_v4  ;;  %v282_v9 = vand.u32 4294901760, %v281_v5  ;;  %v789_v5 = vstv %s810_s27 }
  0x5e   :  { %1154 = vmatprep.subr.bf16.mxu1 %v1332_v3  ;;  %1226 = vmatprep.subr.bf16.mxu0 %v1332_v3 }
  0x5f   :  { %v1164_v14 = vpack.c.bf16 %v282_v9, %v275_v8 }
  0x65   :  { %1156 = vmatpush3.bf16.xpose.msra.mxu1 %v1155_v26  ;;  %1228 = vmatpush3.bf16.xpose.msra.mxu0 %v1227_v28  ;;  %v289_v26 = vand.u32 4294901760, %v288_v19  ;;  %v296_v28 = vand.u32 4294901760, %v295_v25 }
  0x66   :  { %1157 = vmatprep.subr.bf16.mxu1 %v1332_v3  ;;  %1229 = vmatprep.subr.bf16.mxu0 %v1332_v3 }
  0x67   :  { %v1167_v33 = vpack.c.bf16 %v296_v28, %v289_v26 }
  0x6d   :  { %1159 = vmatpush3.bf16.xpose.msra.mxu1 %v1158_v44  ;;  %1231 = vmatpush3.bf16.xpose.msra.mxu0 %v1230_v51  ;;  %v303_v44 = vand.u32 4294901760, %v302_v42  ;;  %v310_v51 = vand.u32 4294901760, %v309_v43 }
  0x6e   :  { %1160 = vmatprep.subr.bf16.mxu1 %v1332_v3  ;;  %1232 = vmatprep.subr.bf16.mxu0 %v1332_v3 }
  0x6f   :  { %v1170_v52 = vpack.c.bf16 %v310_v51, %v303_v44 }
  0x75   :  { %1162 = vmatpush3.bf16.xpose.msra.mxu1 %v1161_v0  ;;  %1234 = vmatpush3.bf16.xpose.msra.mxu0 %v1233_v2 }
  0x76   :  { %1163 = vmatprep.subr.bf16.mxu1 %v1332_v3  ;;  %1235 = vmatprep.subr.bf16.mxu0 %v1332_v3 }
  0x7d   :  { %1165 = vmatpush3.bf16.xpose.msra.mxu1 %v1164_v14  ;;  %1237 = vmatpush3.bf16.xpose.msra.mxu0 %v1236_v18 }
  0x7e   :  { %1166 = vmatprep.subr.bf16.mxu1 %v1332_v3  ;;  %1238 = vmatprep.subr.bf16.mxu0 %v1332_v3 }
  0x85   :  { %1168 = vmatpush3.bf16.xpose.msra.mxu1 %v1167_v33  ;;  %1240 = vmatpush3.bf16.xpose.msra.mxu0 %v1239_v38 }
  0x86   :  { %1169 = vmatprep.subr.bf16.mxu1 %v1332_v3  ;;  %1241 = vmatprep.subr.bf16.mxu0 %v1332_v3 }
  0x8d   :  { %1171 = vmatpush3.bf16.xpose.msra.mxu1 %v1170_v52  ;;  %1243 = vmatpush3.bf16.xpose.msra.mxu0 %v1242_v56 }
  0x8e   :  { %1172 = vmatprep.subr.bf16.mxu1 %v1332_v3  ;;  %1244 = vmatprep.subr.bf16.mxu0 %v1332_v3 }
  0x94   :  { %982 = vmatmul.mubr.f32.vlgmr.msra.gmra.mrb[0].mxu1 %v1517_v15  ;;  %1087 = vmatmul.mubr.f32.vlgmr.msra.gmra.mrb[0].mxu0 %v1517_v15 }
  0x95   :  { %1174 = vmatpush3.bf16.xpose.msra.mxu1 %v1173_v47  ;;  %1246 = vmatpush3.bf16.xpose.msra.mxu0 %v1383_v11 }
  0x96   :  { %1175 = vmatprep.subr.bf16.mxu1 %v1332_v3  ;;  %1247 = vmatprep.subr.bf16.mxu0 %v1332_v3 }
  0x97   :  { %1016 = vmatprep.mubr.msk.f32.mxu1 %vm1333_vm1, %v1334_v23  ;;  %1121 = vmatprep.mubr.msk.f32.mxu0 %vm1333_vm1, %v1334_v23 }
  0x9d   :  { %1177 = vmatpush3.bf16.xpose.msra.mxu1 %v1176_v49  ;;  %1249 = vmatpush3.bf16.xpose.msra.mxu0 %v1395_v16 }
  0x9e   :  { %1178 = vmatprep.subr.bf16.mxu1 %v1332_v3  ;;  %1250 = vmatprep.subr.bf16.mxu0 %v1332_v3 }
  0xa5   :  { %1180 = vmatpush3.bf16.xpose.msra.mxu1 %v1179_v50  ;;  %1252 = vmatpush3.bf16.xpose.msra.mxu0 %v1413_v24 }
  0xa6   :  { %1181 = vmatprep.subr.bf16.mxu1 %v1332_v3  ;;  %1253 = vmatprep.subr.bf16.mxu0 %v1332_v3 }
  0xa7   :  { %v55_v11 = vpop.permute.xlu0 %54 }
  0xad   :  { %1183 = vmatpush3.bf16.xpose.msra.mxu1 %v1182_v53  ;;  %1255 = vmatpush3.bf16.xpose.msra.mxu0 %v1428_v32 }
  0xae   :  { %1184 = vmatprep.subr.bf16.mxu1 %v1332_v3  ;;  %1256 = vmatprep.subr.bf16.mxu0 %v1332_v3 }
  0xb5   :  { %1186 = vmatpush3.bf16.xpose.msra.mxu1 %v1185_v54  ;;  %1258 = vmatpush3.bf16.xpose.msra.mxu0 %v1473_v55 }
  0xb6   :  { %1187 = vmatprep.subr.bf16.mxu1 %v1332_v3  ;;  %1259 = vmatprep.subr.bf16.mxu0 %v1332_v3 }
  0xbd   :  { %1189 = vmatpush3.bf16.xpose.msra.mxu1 %v1188_v62  ;;  %1261 = vmatpush3.bf16.xpose.msra.mxu0 %v1493_v1  ;;  %v770_v62 = vstv %s31_s2 }
  0xbe   :  { %1190 = vmatprep.subr.bf16.mxu1 %v1332_v3  ;;  %1262 = vmatprep.subr.bf16.mxu0 %v1332_v3 }
  0xc5   :  { %1192 = vmatpush3.bf16.xpose.msra.mxu1 %v1191_v12  ;;  %1264 = vmatpush3.bf16.xpose.msra.mxu0 %v1519_v17 }
  0xc6   :  { %1193 = vmatprep.subr.bf16.mxu1 %v1332_v3  ;;  %1265 = vmatprep.subr.bf16.mxu0 %v1332_v3 }
  0xcd   :  { %1195 = vmatpush3.bf16.xpose.msra.mxu1 %v1194_v27  ;;  %1267 = vmatpush3.bf16.xpose.msra.mxu0 %v1537_v29 }
  0xd4   :  { %1017 = vmatmul.mubr.f32.vlgmr.msra.gmra.mrb[0].mxu1 %v1526_v22  ;;  %1122 = vmatmul.mubr.f32.vlgmr.msra.gmra.mrb[0].mxu0 %v1517_v15 }
 0x1a7   :  { %v451_v16 = vpop.f32.mrb[0].mxu1  ;;  %v746_v23 = vpop.f32.mrb[0].mxu0 }
 0x1a8   :  { %v1268_v24 = vadd.f32 %v451_v16, %v55_v11  ;;  %v1018_v32 = vpop.f32.mrb[1].mxu1  ;;  %v1123_v34 = vpop.f32.mrb[1].mxu0 }
 0x1aa   :  { %v1269_v35 = vadd.f32 %v1268_v24, %v746_v23 }
 0x1ac   :  { %v751_v3 = vsel %vm750_vm2, %v1269_v35, -inf }
 0x1ad   :  { %v752_v36 = vrot.slane %v751_v3, 4 }
 0x1af   :  { %v753_v37 = vmax.f32 %v751_v3, %v752_v36 }
 0x1b1   :  { %v754_v39 = vrot.slane %v753_v37, 2 }
 0x1b3   :  { %v755_v40 = vmax.f32 %v753_v37, %v754_v39 }
 0x1b5   :  { %v756_v41 = vrot.slane %v755_v40, 1 }
 0x1b7   :  { %v757_v45 = vmax.f32 %v755_v40, %v756_v41 }
 0x1b9   :  { %v758_v46 = vsub.f32 %v1269_v35, %v757_v45 }
 0x1bb   :  { %v759_v47 = vmul.f32 1.442695, %v758_v46 }
 0x1bd   :  { %1285 = vpow2.f32 %v759_v47 }
 0x1c7   :  { %v1286_v48 = vpop.eup %1285 }
 0x1c8   :  { %v761_v49 = vsel %vm750_vm2, %v1286_v48, 0.0  ;;  %v811_v7 = vadd.f32 -1.0, %v1286_v48 }
 0x1c9   :  { %v762_v50 = vrot.slane %v761_v49, 4 }
 0x1cb   :  { %v763_v53 = vadd.f32 %v762_v50, %v761_v49 }
 0x1cd   :  { %v764_v54 = vrot.slane %v763_v53, 2 }
 0x1cf   :  { %v765_v55 = vadd.f32 %v764_v54, %v763_v53 }
 0x1d1   :  { %v766_v58 = vrot.slane %v765_v55, 1 }
 0x1d3   :  { %v767_v59 = vadd.f32 %v766_v58, %v765_v55 }
 0x1d5   :  { %1287 = vrcp.f32 %v767_v59 }
 0x1df   :  { %v1288_v1 = vpop.eup %1287 }
 0x1e0   :  { %v771_v6 = vmul.f32 %v1288_v1, %v770_v62 }
 0x1e2   :  { %v773_v12 = vmul.f32 %v811_v7, %v771_v6 }
 0x1e4   :  { %v774_v15 = vmul.f32 1.442695, %v773_v12 }
 0x1e6   :  { %1289 = vpow2.f32 %v774_v15 }
 0x1f0   :  { %v1290_v17 = vpop.eup %1289 }
 0x1f1   :  { %v776_v20 = vsel %vm750_vm2, %v1290_v17, 0.0 }
 0x1f2   :  { %v777_v21 = vrot.slane %v776_v20, 4 }
 0x1f4   :  { %v778_v22 = vadd.f32 %v777_v21, %v776_v20 }
 0x1f6   :  { %v779_v27 = vrot.slane %v778_v22, 2 }
 0x1f8   :  { %v780_v29 = vadd.f32 %v779_v27, %v778_v22 }
 0x1fa   :  { %v781_v57 = vrot.slane %v780_v29, 1 }
 0x1fc   :  { %v782_v60 = vadd.f32 %v781_v57, %v780_v29 }
 0x1fe   :  { %1291 = vlog2.f32 %v782_v60 }
 0x208   :  { %v1292_v61 = vpop.eup %1291 }
 0x209   :  { %v784_v0 = vmul.f32 0.6931472, %v1292_v61 }
 0x20b   :  { %v786_v2 = vmul.f32 %v785_v63, %v784_v0 }
 0x20d   :  { %v787_v4 = vadd.f32 %v1288_v1, %v786_v2 }
 0x20f   :  { %v788_v8 = vsub.f32 1.0, %v787_v4 }
 0x211   :  { %v790_v9 = vmul.f32 %v789_v5, %v788_v8 }
 0x213   :  { %v791_v10 = vmax.f32 %v790_v9, 1e-08 }
 0x215   :  { %v792_v13 = vmin.f32 %v791_v10, 1.0 }
 0x217   :  { %793 = vst [vmem:[#allocation5] sm:$0x1] %v792_v13 }
 0x218   :  { %1316 = shalt.err (!%p1313_p9)
}
 0x219   :  { %s1317_s8 = scalar_lea.hbm %s1670_s4, 16 }
 0x21a   :  { %p1318_p10 = scmp.ne.s32.totalorder %s1670_s4, %s1317_s8  ;;  %p1321_p11 = scmp.lt.u32.totalorder %s1317_s8, %s1670_s4 }
 0x21c   :  { %p1323_p12 = pnand %p1321_p11, %p1318_p10 }
 0x21e   :  { %1326 = shalt.err (!%p1323_p12)
}
 0x21f   :  { %803 = dma.vmem_to_hbm [thread:$0]  %s801_s29, 16, %s1670_s4, [#allocation3]  }
 0x220   :  { %1329 = dma.done.wait [#allocation3], 16  }
 0x221   :  { %1330 = vsyncadd [#allocation3], 4294967280 }
 0x222   :  { %807 = vsyncpa [#allocation3], 1 }
 0x223   :  { %808 = vsyncpa [#allocation4], 1 }

</bundles_post_ra>
